<compile_context>
chip_gen: v7x
topology: tpu7x:2x2x1
jax: 0.10.0
libtpu: 0.0.40
codegen_flags: <defaults>
</compile_context>

<pallas_src>
import functools

import numpy as np
import jax
import jax.numpy as jnp
from jax import lax
from jax.experimental import pallas as pl
from jax.experimental.pallas import tpu as pltpu

B_SZ = 3
BOARD = B_SZ * B_SZ            # 9
NPOS = BOARD * BOARD           # 81 board positions
LANE = 128


def _round_up(a, b):
    return (a + b - 1) // b * b


# ---------------------------------------------------------------------------
# Constant 0/1 selector tensors (numpy, built once at import) used to scatter
# conv weights into dense full-board operators (weight-side im2col).
# ---------------------------------------------------------------------------
def _build_selectors():
    # conv0: 3x3, stride 1, pad 1.  S0[p_out, i, j, p_in] = 1 iff input pos
    # p_in feeds tap (i, j) of output pos p_out (zero padding outside board).
    S0 = np.zeros((NPOS, 3, 3, NPOS), np.float32)
    for h in range(BOARD):
        for w in range(BOARD):
            for i in range(3):
                for j in range(3):
                    hh, ww = h + i - 1, w + j - 1
                    if 0 <= hh < BOARD and 0 <= ww < BOARD:
                        S0[h * BOARD + w, i, j, hh * BOARD + ww] = 1.0
    # conv1: 3x3 kernel, stride 3 -> 3x3 output cells.
    S1 = np.zeros((3, 3, 3, 3, NPOS), np.float32)
    for r in range(3):
        for s in range(3):
            for i in range(3):
                for j in range(3):
                    S1[r, s, i, j, (3 * r + i) * BOARD + (3 * s + j)] = 1.0
    # conv2: (3, 9) kernel, stride 3 -> 3x1 output.
    S2 = np.zeros((3, 3, BOARD, NPOS), np.float32)
    for r in range(3):
        for i in range(3):
            for j in range(BOARD):
                S2[r, i, j, (3 * r + i) * BOARD + j] = 1.0
    # conv3: (9, 3) kernel, stride 3 -> 1x3 output.
    S3 = np.zeros((3, BOARD, 3, NPOS), np.float32)
    for s in range(3):
        for i in range(BOARD):
            for j in range(3):
                S3[s, i, j, i * BOARD + (3 * s + j)] = 1.0
    return S0, S1, S2, S3


_S0, _S1, _S2, _S3 = _build_selectors()


# ---------------------------------------------------------------------------
# Pallas kernels
# ---------------------------------------------------------------------------
def _feat_kernel(x_ref, w_ref, b_ref, feat_ref, stats_ref, *, n_valid, tb):
    """Entire (folded) conv stack for one batch tile: one MXU matmul.

    Also emits masked BatchNorm partial statistics for this tile:
    row 0 of stats = sum over valid rows, row 1 = sum of squares, rows 2..7 = 0.
    """
    acc = jnp.dot(x_ref[...], w_ref[...],
                  preferred_element_type=jnp.float32) + b_ref[...]      # (tb, FP) f32
    feat_ref[...] = acc.astype(feat_ref.dtype)                          # bf16 store

    # Exclude zero-padded batch rows (they carry the bias) from the BN stats.
    row = pl.program_id(0) * tb + lax.broadcasted_iota(jnp.int32, acc.shape, 0)
    fm = jnp.where(row < n_valid, acc, 0.0)
    s1 = jnp.sum(fm, axis=0, keepdims=True)                             # (1, FP)
    s2 = jnp.sum(fm * fm, axis=0, keepdims=True)                        # (1, FP)
    srow = lax.broadcasted_iota(jnp.int32, (8, acc.shape[1]), 0)
    stats_ref[...] = jnp.where(srow == 0, s1, jnp.where(srow == 1, s2, 0.0))


def _head_kernel(f_ref, scale_ref, shift_ref, w_ref, bh_ref, mask_ref,
                 out_ref, *, v_col):
    """BN affine + ReLU + merged [pi|v] linear + LogSoftmax / Tanh (one tile).

    tanh(v) is packed into column `v_col` of the lane-dense output block.
    """
    f = f_ref[...].astype(jnp.float32)                                  # (tb, FP)
    h = jnp.maximum(f * scale_ref[...] + shift_ref[...], 0.0)
    z = jnp.dot(h.astype(jnp.bfloat16), w_ref[...],
                preferred_element_type=jnp.float32) + bh_ref[...]       # (tb, AP)
    zm = z + mask_ref[...]            # -1e30 on the v column and lane padding
    m = jnp.max(zm, axis=1, keepdims=True)
    lse = jnp.log(jnp.sum(jnp.exp(zm - m), axis=1, keepdims=True))
    logpi = zm - m - lse
    col = lax.broadcasted_iota(jnp.int32, z.shape, 1)
    out_ref[...] = jnp.where(col == v_col, jnp.tanh(z), logpi)


# ---------------------------------------------------------------------------
# Wrapper: weight-side im2col + conv-chain fold + two pallas_calls
# ---------------------------------------------------------------------------
def _expand_conv_operators(params, channels, width):
    """Scatter conv weights into dense full-board matrices.

    Rows are indexed (channel, position) = k*81 + (h*9 + w); columns follow
    PyTorch's .view(N, -1) flattening of each conv output.
    """
    K = channels + width
    S0, S1, S2, S3 = (jnp.asarray(s) for s in (_S0, _S1, _S2, _S3))

    # conv0: (C*81) -> (width*81)
    A0 = jnp.einsum('fcij,pijq->cqfp', params["conv0_w"], S0)
    A0 = A0.reshape(channels * NPOS, width * NPOS)
    b0 = jnp.repeat(params["conv0_b"], NPOS)

    # conv1..conv4: (K*81) -> (36*width), output blocks ordered [x1,x2,x3,x4]
    B1 = jnp.einsum('fkij,rsijp->kpfrs', params["conv1_w"], S1)
    B1 = B1.reshape(K * NPOS, width * 9)
    B2 = jnp.einsum('fkij,rijp->kpfr', params["conv2_w"], S2)
    B2 = B2.reshape(K * NPOS, 3 * width * 3)
    B3 = jnp.einsum('fkij,sijp->kpfs', params["conv3_w"], S3)
    B3 = B3.reshape(K * NPOS, 3 * width * 3)
    B4 = jnp.transpose(params["conv4_w"].reshape(BOARD * width, K, NPOS),
                       (1, 2, 0)).reshape(K * NPOS, BOARD * width)
    Wall = jnp.concatenate([B1, B2, B3, B4], axis=1)                  # (K*81, 36w)
    ball = jnp.concatenate([jnp.repeat(params["conv1_b"], 9),
                            jnp.repeat(params["conv2_b"], 3),
                            jnp.repeat(params["conv3_b"], 3),
                            params["conv4_b"]])                       # (36w,)
    Wx = Wall[:channels * NPOS]      # rows seen by the raw-x channels of y
    Wc0 = Wall[channels * NPOS:]     # rows seen by the conv0-output channels
    return A0, b0, Wx, Wc0, ball


def ut3nnet_forward(params, x):
    N, C, H, Wd = x.shape            # NCHW, H = Wd = 9
    assert (H, Wd) == (BOARD, BOARD)
    width = params["conv0_w"].shape[0]
    actions = params["pi_w"].shape[0]
    F = 4 * BOARD * width            # 36 * width
    CIN = C * NPOS

    CP = _round_up(CIN, LANE)        # padded x contraction dim
    FP = _round_up(F, LANE)          # padded feature dim
    AP = _round_up(actions + 1, LANE)  # padded merged [pi|v] output dim

    # ---- fold conv0 into conv1..4: exact, done once per call in f32.
    # (In a training loop these small einsums/matmuls would be cached per
    #  parameter update; they are negligible next to the batched matmuls.)
    A0, b0, Wx, Wc0, ball = _expand_conv_operators(params, C, width)
    W_comb = Wx + A0 @ Wc0                                            # (C*81, F)
    b_comb = b0 @ Wc0 + ball                                          # (F,)
    Wp = jnp.pad(W_comb, ((0, CP - CIN), (0, FP - F))).astype(jnp.bfloat16)
    bp = jnp.pad(b_comb, (0, FP - F)).reshape(1, FP).astype(jnp.float32)

    # merged [pi | v] head (single MXU matmul), lane-padded to AP columns
    Whead = jnp.concatenate([params["pi_w"].T, params["v_w"].T], axis=1)   # (F, A+1)
    Wheadp = jnp.pad(Whead, ((0, FP - F), (0, AP - (actions + 1)))).astype(jnp.bfloat16)
    bheadp = jnp.pad(jnp.concatenate([params["pi_b"], params["v_b"]]),
                     (0, AP - (actions + 1))).reshape(1, AP).astype(jnp.float32)
    maskp = jnp.where(jnp.arange(AP) < actions, 0.0, -1e30)
    maskp = maskp.reshape(1, AP).astype(jnp.float32)
    gamma_p = jnp.pad(params["bn_gamma"], (0, FP - F))                # pad with 0
    beta_p = jnp.pad(params["bn_beta"], (0, FP - F))

    # ---- batch tiling: multiples of 16 rows (bf16 sublane pack), up to 512
    # rows per tile for large N, and >=2 tiles for mid-size N so v7x's two
    # TensorCores can both run ("parallel" grid axis).
    if N <= 16:
        tb = 16
    else:
        tb = min(512, _round_up((N + 1) // 2, 16))
    Np = _round_up(N, tb)
    G = Np // tb

    X = x.reshape(N, CIN)                              # (c, h, w) flattening
    Xp = jnp.pad(X, ((0, Np - N), (0, CP - CIN))).astype(jnp.bfloat16)

    # ---- kernel 1: folded conv stack + masked BN partial sums, batch-tiled.
    feat, stats = pl.pallas_call(
        functools.partial(_feat_kernel, n_valid=N, tb=tb),
        out_shape=(jax.ShapeDtypeStruct((Np, FP), jnp.bfloat16),
                   jax.ShapeDtypeStruct((G * 8, FP), jnp.float32)),
        grid=(G,),
        in_specs=[
            pl.BlockSpec((tb, CP), lambda i: (i, 0)),
            pl.BlockSpec((CP, FP), lambda i: (0, 0)),
            pl.BlockSpec((1, FP), lambda i: (0, 0)),
        ],
        out_specs=[
            pl.BlockSpec((tb, FP), lambda i: (i, 0)),
            pl.BlockSpec((8, FP), lambda i: (i, 0)),
        ],
        compiler_params=pltpu.CompilerParams(
            dimension_semantics=("parallel",),
            vmem_limit_bytes=32 * 1024 * 1024,
        ),
    )(Xp, Wp, bp)

    # ---- tiny XLA reduction of the per-tile stats -> BN affine (scale, shift)
    stats3 = stats.reshape(G, 8, FP)
    s1 = jnp.sum(stats3[:, 0, :], axis=0)
    s2 = jnp.sum(stats3[:, 1, :], axis=0)
    mean = s1 / N
    var = jnp.maximum(s2 / N - mean * mean, 0.0)      # biased var (PyTorch BN norm)
    inv = lax.rsqrt(var + 1e-5)
    scale = (gamma_p * inv).reshape(1, FP).astype(jnp.float32)
    shift = (beta_p - mean * gamma_p * inv).reshape(1, FP).astype(jnp.float32)

    # ---- kernel 2: BN affine + ReLU + merged heads, batch-tiled & parallel.
    # TODO(synk): nn.Dropout is constructed in __init__ but never applied in
    # forward(), so it is intentionally omitted.  For eval-mode BN (running
    # stats) scale/shift become trace-time constants and this stage could be
    # fused into kernel 1 entirely.
    out = pl.pallas_call(
        functools.partial(_head_kernel, v_col=actions),
        out_shape=jax.ShapeDtypeStruct((Np, AP), jnp.float32),
        grid=(G,),
        in_specs=[
            pl.BlockSpec((tb, FP), lambda i: (i, 0)),
            pl.BlockSpec((1, FP), lambda i: (0, 0)),
            pl.BlockSpec((1, FP), lambda i: (0, 0)),
            pl.BlockSpec((FP, AP), lambda i: (0, 0)),
            pl.BlockSpec((1, AP), lambda i: (0, 0)),
            pl.BlockSpec((1, AP), lambda i: (0, 0)),
        ],
        out_specs=pl.BlockSpec((tb, AP), lambda i: (i, 0)),
        compiler_params=pltpu.CompilerParams(
            dimension_semantics=("parallel",),
            vmem_limit_bytes=32 * 1024 * 1024,
        ),
    )(feat, scale, shift, Wheadp, bheadp, maskp)

    log_pi = out[:N, :actions]
    v = out[:N, actions:actions + 1]
    return log_pi, v


# ---------------------------------------------------------------------------
# Deterministic parameter initialization
# ---------------------------------------------------------------------------
def init_params(key, channels, width, actions):
    K = channels + width
    F = 4 * BOARD * width
    ks = jax.random.split(key, 16)
    n = lambda k, shape, s=0.1: (s * jax.random.normal(k, shape)).astype(jnp.float32)
    return {
        "conv0_w": n(ks[0], (width, channels, 3, 3)),
        "conv0_b": n(ks[1], (width,)),
        "conv1_w": n(ks[2], (width, K, B_SZ, B_SZ)),
        "conv1_b": n(ks[3], (width,)),
        "conv2_w": n(ks[4], (B_SZ * width, K, B_SZ, BOARD)),
        "conv2_b": n(ks[5], (B_SZ * width,)),
        "conv3_w": n(ks[6], (B_SZ * width, K, BOARD, B_SZ)),
        "conv3_b": n(ks[7], (B_SZ * width,)),
        "conv4_w": n(ks[8], (BOARD * width, K, BOARD, BOARD)),
        "conv4_b": n(ks[9], (BOARD * width,)),
        "bn_gamma": jnp.ones((F,), jnp.float32),
        "bn_beta": jnp.zeros((F,), jnp.float32),
        "pi_w": n(ks[10], (actions, F)),
        "pi_b": n(ks[11], (actions,)),
        "v_w": n(ks[12], (1, F)),
        "v_b": n(ks[13], (1,)),
    }


# ---------------------------------------------------------------------------
# Pure-JAX reference (independent of the weight-expansion/fold path) for sanity
# ---------------------------------------------------------------------------
def _reference_forward(params, x):
    dn = ('NCHW', 'OIHW', 'NCHW')
    c0 = lax.conv_general_dilated(x, params["conv0_w"], (1, 1),
                                  ((1, 1), (1, 1)), dimension_numbers=dn)
    c0 = c0 + params["conv0_b"][None, :, None, None]
    y = jnp.concatenate([x, c0], axis=1)

    def conv(w, b, stride):
        o = lax.conv_general_dilated(y, w, stride, 'VALID', dimension_numbers=dn)
        return o + b[None, :, None, None]

    N = x.shape[0]
    x1 = conv(params["conv1_w"], params["conv1_b"], (3, 3)).reshape(N, -1)
    x2 = conv(params["conv2_w"], params["conv2_b"], (3, 3)).reshape(N, -1)
    x3 = conv(params["conv3_w"], params["conv3_b"], (3, 3)).reshape(N, -1)
    x4 = conv(params["conv4_w"], params["conv4_b"], (1, 1)).reshape(N, -1)
    feat = jnp.concatenate([x1, x2, x3, x4], axis=1)
    mean = jnp.mean(feat, axis=0, keepdims=True)
    var = jnp.mean((feat - mean) ** 2, axis=0, keepdims=True)
    h = jnp.maximum((feat - mean) * lax.rsqrt(var + 1e-5) * params["bn_gamma"]
                    + params["bn_beta"], 0.0)
    pi = h @ params["pi_w"].T + params["pi_b"]
    v = h @ params["v_w"].T + params["v_b"]
    return jax.nn.log_softmax(pi, axis=1), jnp.tanh(v)


# ---------------------------------------------------------------------------
if __name__ == "__main__":
    batch = 2
    channels = 4                  # game.getBoardChannels()
    width = 8                     # args.width
    actions = BOARD * BOARD + 1   # 82 (9x9 moves + pass), game.getActionSize()

    key = jax.random.PRNGKey(0)
    k_param, k_x = jax.random.split(key)
    params = init_params(k_param, channels, width, actions)
    x = jax.random.normal(k_x, (batch, channels, BOARD, BOARD), dtype=jnp.float32)

    fwd = jax.jit(ut3nnet_forward)
    log_pi, v = fwd(params, x)
    jax.block_until_ready((log_pi, v))

    assert log_pi.shape == (batch, actions)
    assert v.shape == (batch, 1)
    assert bool(jnp.all(jnp.isfinite(log_pi))) and bool(jnp.all(jnp.isfinite(v)))

    # Loose cross-check vs. a pure-JAX f32 reference (bf16 MXU operands, bf16
    # feat storage and batch-stat BN at batch=2 legitimately give ~1e-1 level
    # differences; the loose bound only guards against structural/indexing
    # errors in the fold / selectors / head packing).
    ref_pi, ref_v = _reference_forward(params, x)
    assert float(jnp.max(jnp.abs(log_pi - ref_pi))) < 1.0
    assert float(jnp.max(jnp.abs(v - ref_v))) < 0.5

    print("KERNEL_OK")
</pallas_src>

<mosaic_0001>
module attributes {stable_mosaic.version = 11 : i64} {
  func.func @_feat_kernel(%arg0: i32, %arg1: memref<16x384xbf16, #tpu.memory_space<vmem>>, %arg2: memref<384x384xbf16, #tpu.memory_space<vmem>>, %arg3: memref<1x384xf32, #tpu.memory_space<vmem>>, %arg4: memref<16x384xbf16, #tpu.memory_space<vmem>>, %arg5: memref<8x384xf32, #tpu.memory_space<vmem>>) attributes {dimension_semantics = [#tpu.dimension_semantics<parallel>], iteration_bounds = array<i64: 1>, scalar_prefetch = 0 : i64, scratch_operands = 0 : i64, tpu.core_type = #tpu.core_type<tc>, window_params = [{transform_indices = @transform_0, window_bounds = array<i64: 16, 384>}, {pipeline_mode = #tpu.pipeline_mode<synchronous>, transform_indices = @transform_1, window_bounds = array<i64: 384, 384>}, {pipeline_mode = #tpu.pipeline_mode<synchronous>, transform_indices = @transform_2, window_bounds = array<i64: 1, 384>}, {transform_indices = @transform_3, window_bounds = array<i64: 16, 384>}, {transform_indices = @transform_4, window_bounds = array<i64: 8, 384>}]} {
    %c0 = arith.constant 0 : index
    %c0_0 = arith.constant 0 : index
    %0 = vector.load %arg1[%c0, %c0_0] : memref<16x384xbf16, #tpu.memory_space<vmem>>, vector<16x384xbf16>
    %c0_1 = arith.constant 0 : index
    %c0_2 = arith.constant 0 : index
    %1 = vector.load %arg2[%c0_1, %c0_2] : memref<384x384xbf16, #tpu.memory_space<vmem>>, vector<384x384xbf16>
    %cst = arith.constant dense<0.000000e+00> : vector<16x384xf32>
    %2 = tpu.matmul %0, %1, %cst {dimension_numbers = #tpu.dot_dimension_numbers<[1], [0], [0], [1], [0, 0, 1, 1], [], []>} : vector<16x384xbf16>, vector<384x384xbf16>, vector<16x384xf32> -> vector<16x384xf32>
    %c0_3 = arith.constant 0 : index
    %c0_4 = arith.constant 0 : index
    %3 = vector.load %arg3[%c0_3, %c0_4] : memref<1x384xf32, #tpu.memory_space<vmem>>, vector<1x384xf32>
    %4 = vector.broadcast %3 : vector<1x384xf32> to vector<16x384xf32>
    %5 = arith.addf %2, %4 : vector<16x384xf32>
    %6 = arith.truncf %5 : vector<16x384xf32> to vector<16x384xbf16>
    %c0_5 = arith.constant 0 : index
    %c0_6 = arith.constant 0 : index
    %7 = vector.load %arg4[%c0_5, %c0_6] : memref<16x384xbf16, #tpu.memory_space<vmem>>, vector<16x384xbf16>
    tpu.vector_store %arg4[%c0_5, %c0_6], %6 {strides = array<i32>} : memref<16x384xbf16, #tpu.memory_space<vmem>>, vector<16x384xbf16>,
    %c16_i32 = arith.constant 16 : i32
    %8 = arith.muli %arg0, %c16_i32 : i32
    %9 = tpu.iota {dimensions = array<i32: 0>} : vector<16x384xi32>
    %10 = vector.broadcast %8 : i32 to vector<16x384xi32>
    %11 = arith.addi %10, %9 : vector<16x384xi32>
    %c2_i32 = arith.constant 2 : i32
    %12 = vector.broadcast %c2_i32 : i32 to vector<16x384xi32>
    %13 = arith.cmpi slt, %11, %12 : vector<16x384xi32>
    %cst_7 = arith.constant 0.000000e+00 : f32
    %14 = vector.broadcast %cst_7 : f32 to vector<16x384xf32>
    %15 = arith.select %13, %5, %14 : vector<16x384xi1>, vector<16x384xf32>
    %cst_8 = arith.constant dense<0.000000e+00> : vector<384xf32>
    %16 = vector.multi_reduction <add>, %15, %cst_8 [0] : vector<16x384xf32> to vector<384xf32>
    %17 = vector.shape_cast %16 : vector<384xf32> to vector<1x384xf32>
    %18 = arith.mulf %15, %15 : vector<16x384xf32>
    %cst_9 = arith.constant dense<0.000000e+00> : vector<384xf32>
    %19 = vector.multi_reduction <add>, %18, %cst_9 [0] : vector<16x384xf32> to vector<384xf32>
    %20 = vector.shape_cast %19 : vector<384xf32> to vector<1x384xf32>
    %21 = tpu.iota {dimensions = array<i32: 0>} : vector<8x384xi32>
    %c0_i32 = arith.constant 0 : i32
    %22 = vector.broadcast %c0_i32 : i32 to vector<8x384xi32>
    %23 = arith.cmpi eq, %21, %22 : vector<8x384xi32>
    %c1_i32 = arith.constant 1 : i32
    %24 = vector.broadcast %c1_i32 : i32 to vector<8x384xi32>
    %25 = arith.cmpi eq, %21, %24 : vector<8x384xi32>
    %cst_10 = arith.constant 0.000000e+00 : f32
    %26 = vector.shape_cast %20 : vector<1x384xf32> to vector<1x384xf32>
    %27 = vector.broadcast %26 : vector<1x384xf32> to vector<8x384xf32>
    %28 = vector.broadcast %cst_10 : f32 to vector<8x384xf32>
    %29 = arith.select %25, %27, %28 : vector<8x384xi1>, vector<8x384xf32>
    %30 = vector.shape_cast %17 : vector<1x384xf32> to vector<1x384xf32>
    %31 = vector.broadcast %30 : vector<1x384xf32> to vector<8x384xf32>
    %32 = arith.select %23, %31, %29 : vector<8x384xi1>, vector<8x384xf32>
    %c0_11 = arith.constant 0 : index
    %c0_12 = arith.constant 0 : index
    %33 = vector.load %arg5[%c0_11, %c0_12] : memref<8x384xf32, #tpu.memory_space<vmem>>, vector<8x384xf32>
    tpu.vector_store %arg5[%c0_11, %c0_12], %32 {strides = array<i32>} : memref<8x384xf32, #tpu.memory_space<vmem>>, vector<8x384xf32>,
    return
  }
  func.func @transform_0(%arg0: i32) -> (i32, i32) {
    %c0_i32 = arith.constant 0 : i32
    %c0_i32_0 = arith.constant 0 : i32
    return %arg0, %c0_i32 : i32, i32
  }
  func.func @transform_1(%arg0: i32) -> (i32, i32) {
    %c0_i32 = arith.constant 0 : i32
    %c0_i32_0 = arith.constant 0 : i32
    %c0_i32_1 = arith.constant 0 : i32
    return %c0_i32, %c0_i32_0 : i32, i32
  }
  func.func @transform_2(%arg0: i32) -> (i32, i32) {
    %c0_i32 = arith.constant 0 : i32
    %c0_i32_0 = arith.constant 0 : i32
    %c0_i32_1 = arith.constant 0 : i32
    return %c0_i32, %c0_i32_0 : i32, i32
  }
  func.func @transform_3(%arg0: i32) -> (i32, i32) {
    %c0_i32 = arith.constant 0 : i32
    %c0_i32_0 = arith.constant 0 : i32
    return %arg0, %c0_i32 : i32, i32
  }
  func.func @transform_4(%arg0: i32) -> (i32, i32) {
    %c0_i32 = arith.constant 0 : i32
    %c0_i32_0 = arith.constant 0 : i32
    return %arg0, %c0_i32 : i32, i32
  }
}

module attributes {stable_mosaic.version = 11 : i64} {
  func.func @_head_kernel(%arg0: i32, %arg1: memref<16x384xbf16, #tpu.memory_space<vmem>>, %arg2: memref<1x384xf32, #tpu.memory_space<vmem>>, %arg3: memref<1x384xf32, #tpu.memory_space<vmem>>, %arg4: memref<384x128xbf16, #tpu.memory_space<vmem>>, %arg5: memref<1x128xf32, #tpu.memory_space<vmem>>, %arg6: memref<1x128xf32, #tpu.memory_space<vmem>>, %arg7: memref<16x128xf32, #tpu.memory_space<vmem>>) attributes {dimension_semantics = [#tpu.dimension_semantics<parallel>], iteration_bounds = array<i64: 1>, scalar_prefetch = 0 : i64, scratch_operands = 0 : i64, tpu.core_type = #tpu.core_type<tc>, window_params = [{transform_indices = @transform_0, window_bounds = array<i64: 16, 384>}, {pipeline_mode = #tpu.pipeline_mode<synchronous>, transform_indices = @transform_1, window_bounds = array<i64: 1, 384>}, {pipeline_mode = #tpu.pipeline_mode<synchronous>, transform_indices = @transform_2, window_bounds = array<i64: 1, 384>}, {pipeline_mode = #tpu.pipeline_mode<synchronous>, transform_indices = @transform_3, window_bounds = array<i64: 384, 128>}, {pipeline_mode = #tpu.pipeline_mode<synchronous>, transform_indices = @transform_4, window_bounds = array<i64: 1, 128>}, {pipeline_mode = #tpu.pipeline_mode<synchronous>, transform_indices = @transform_5, window_bounds = array<i64: 1, 128>}, {transform_indices = @transform_6, window_bounds = array<i64: 16, 128>}]} {
    %c0 = arith.constant 0 : index
    %c0_0 = arith.constant 0 : index
    %0 = vector.load %arg1[%c0, %c0_0] : memref<16x384xbf16, #tpu.memory_space<vmem>>, vector<16x384xbf16>
    %1 = arith.extf %0 : vector<16x384xbf16> to vector<16x384xf32>
    %c0_1 = arith.constant 0 : index
    %c0_2 = arith.constant 0 : index
    %2 = vector.load %arg2[%c0_1, %c0_2] : memref<1x384xf32, #tpu.memory_space<vmem>>, vector<1x384xf32>
    %3 = vector.broadcast %2 : vector<1x384xf32> to vector<16x384xf32>
    %4 = arith.mulf %1, %3 : vector<16x384xf32>
    %c0_3 = arith.constant 0 : index
    %c0_4 = arith.constant 0 : index
    %5 = vector.load %arg3[%c0_3, %c0_4] : memref<1x384xf32, #tpu.memory_space<vmem>>, vector<1x384xf32>
    %6 = vector.broadcast %5 : vector<1x384xf32> to vector<16x384xf32>
    %7 = arith.addf %4, %6 : vector<16x384xf32>
    %cst = arith.constant 0.000000e+00 : f32
    %8 = vector.broadcast %cst : f32 to vector<16x384xf32>
    %9 = arith.maximumf %7, %8 : vector<16x384xf32>
    %10 = arith.truncf %9 : vector<16x384xf32> to vector<16x384xbf16>
    %c0_5 = arith.constant 0 : index
    %c0_6 = arith.constant 0 : index
    %11 = vector.load %arg4[%c0_5, %c0_6] : memref<384x128xbf16, #tpu.memory_space<vmem>>, vector<384x128xbf16>
    %cst_7 = arith.constant dense<0.000000e+00> : vector<16x128xf32>
    %12 = tpu.matmul %10, %11, %cst_7 {dimension_numbers = #tpu.dot_dimension_numbers<[1], [0], [0], [1], [0, 0, 1, 1], [], []>} : vector<16x384xbf16>, vector<384x128xbf16>, vector<16x128xf32> -> vector<16x128xf32>
    %c0_8 = arith.constant 0 : index
    %c0_9 = arith.constant 0 : index
    %13 = vector.load %arg5[%c0_8, %c0_9] : memref<1x128xf32, #tpu.memory_space<vmem>>, vector<1x128xf32>
    %14 = vector.broadcast %13 : vector<1x128xf32> to vector<16x128xf32>
    %15 = arith.addf %12, %14 : vector<16x128xf32>
    %c0_10 = arith.constant 0 : index
    %c0_11 = arith.constant 0 : index
    %16 = vector.load %arg6[%c0_10, %c0_11] : memref<1x128xf32, #tpu.memory_space<vmem>>, vector<1x128xf32>
    %17 = vector.broadcast %16 : vector<1x128xf32> to vector<16x128xf32>
    %18 = arith.addf %15, %17 : vector<16x128xf32>
    %cst_12 = arith.constant dense<0xFF800000> : vector<16xf32>
    %19 = vector.multi_reduction <maximumf>, %18, %cst_12 [1] : vector<16x128xf32> to vector<16xf32>
    %20 = vector.shape_cast %19 : vector<16xf32> to vector<16x1xf32>
    %21 = vector.broadcast %20 : vector<16x1xf32> to vector<16x128xf32>
    %22 = arith.subf %18, %21 : vector<16x128xf32>
    %23 = math.exp %22 : vector<16x128xf32>
    %cst_13 = arith.constant dense<0.000000e+00> : vector<16xf32>
    %24 = vector.multi_reduction <add>, %23, %cst_13 [1] : vector<16x128xf32> to vector<16xf32>
    %25 = vector.shape_cast %24 : vector<16xf32> to vector<16x1xf32>
    %26 = math.log %25 : vector<16x1xf32>
    %27 = vector.broadcast %20 : vector<16x1xf32> to vector<16x128xf32>
    %28 = arith.subf %18, %27 : vector<16x128xf32>
    %29 = vector.broadcast %26 : vector<16x1xf32> to vector<16x128xf32>
    %30 = arith.subf %28, %29 : vector<16x128xf32>
    %31 = tpu.iota {dimensions = array<i32: 1>} : vector<16x128xi32>
    %c82_i32 = arith.constant 82 : i32
    %32 = vector.broadcast %c82_i32 : i32 to vector<16x128xi32>
    %33 = arith.cmpi eq, %31, %32 : vector<16x128xi32>
    %34 = math.tanh %15 : vector<16x128xf32>
    %35 = arith.select %33, %34, %30 : vector<16x128xi1>, vector<16x128xf32>
    %c0_14 = arith.constant 0 : index
    %c0_15 = arith.constant 0 : index
    %36 = vector.load %arg7[%c0_14, %c0_15] : memref<16x128xf32, #tpu.memory_space<vmem>>, vector<16x128xf32>
    tpu.vector_store %arg7[%c0_14, %c0_15], %35 {strides = array<i32>} : memref<16x128xf32, #tpu.memory_space<vmem>>, vector<16x128xf32>,
    return
  }
  func.func @transform_0(%arg0: i32) -> (i32, i32) {
    %c0_i32 = arith.constant 0 : i32
    %c0_i32_0 = arith.constant 0 : i32
    return %arg0, %c0_i32 : i32, i32
  }
  func.func @transform_1(%arg0: i32) -> (i32, i32) {
    %c0_i32 = arith.constant 0 : i32
    %c0_i32_0 = arith.constant 0 : i32
    %c0_i32_1 = arith.constant 0 : i32
    return %c0_i32, %c0_i32_0 : i32, i32
  }
  func.func @transform_2(%arg0: i32) -> (i32, i32) {
    %c0_i32 = arith.constant 0 : i32
    %c0_i32_0 = arith.constant 0 : i32
    %c0_i32_1 = arith.constant 0 : i32
    return %c0_i32, %c0_i32_0 : i32, i32
  }
  func.func @transform_3(%arg0: i32) -> (i32, i32) {
    %c0_i32 = arith.constant 0 : i32
    %c0_i32_0 = arith.constant 0 : i32
    %c0_i32_1 = arith.constant 0 : i32
    return %c0_i32, %c0_i32_0 : i32, i32
  }
  func.func @transform_4(%arg0: i32) -> (i32, i32) {
    %c0_i32 = arith.constant 0 : i32
    %c0_i32_0 = arith.constant 0 : i32
    %c0_i32_1 = arith.constant 0 : i32
    return %c0_i32, %c0_i32_0 : i32, i32
  }
  func.func @transform_5(%arg0: i32) -> (i32, i32) {
    %c0_i32 = arith.constant 0 : i32
    %c0_i32_0 = arith.constant 0 : i32
    %c0_i32_1 = arith.constant 0 : i32
    return %c0_i32, %c0_i32_0 : i32, i32
  }
  func.func @transform_6(%arg0: i32) -> (i32, i32) {
    %c0_i32 = arith.constant 0 : i32
    %c0_i32_0 = arith.constant 0 : i32
    return %arg0, %c0_i32 : i32, i32
  }
}

</mosaic_0001>

<bundles_post_ra>
// kernel: ut3nnet_forward.2
= control target key start
LH: loop header
LB: loop body
LE: loop exit
PB: predicated region body
PF: predicated region fallthrough
CT: control target
= control target key end

     0   :  { %v1053_v38 = vmov 0.0   ;;  %vm1054_vm0 = vmmov 0   ;;  %s1360_s1 = inlined_call_operand.vmem [shape: bf16[384,384], index: 1, kind: input, shape index: {}]   ;;  %s1361_s0 = inlined_call_operand.vmem [shape: bf16[16,384], index: 0, kind: input, shape index: {}]   ;;  %s1362_s2 = inlined_call_operand.vmem [shape: f32[1,384], index: 2, kind: input, shape index: {}]   ;;  %s1363_s3 = inlined_call_operand.vmem [shape: bf16[16,384], index: 3, kind: output, shape index: {0}]   ;;  %s1364_s4 = inlined_call_operand.vmem [shape: f32[8,384], index: 4, kind: output, shape index: {1}]  }
   0x1   :  { %v953_v0 = vld [vmem:[%s1360_s1 + $0x4] ss:$12 sps:$4 sm:$0xff]   ;;  %v955_v1 = vld [vmem:[%s1360_s1 + $0xc8] ss:$12 sps:$4 sm:$0xff]   ;;  %v956_v2 = vld [vmem:[%s1360_s1] ss:$12 sps:$4 sm:$0xff]  }
   0x2   :  { %534 = vmatprep.subr.bf16.mxu0 %v953_v0  ;;  %891 = vmatprep.subr.bf16.mxu1 %v955_v1  ;;  %v957_v3 = vld [vmem:[%s1360_s1 + $0x8] ss:$12 sps:$4 sm:$0xff]   ;;  %v960_v5 = vld [vmem:[%s1360_s1 + $0xe0] ss:$12 sps:$4 sm:$0xff]   ;;  %v961_v6 = vld [vmem:[%s1360_s1 + $0x18] ss:$12 sps:$4 sm:$0xff]  }
   0x3   :  { %535 = vmatpush1.bf16.msra.mxu0 %v956_v2  ;;  %v958_v4 = vld [vmem:[%s1360_s1 + $0x1c] ss:$12 sps:$4 sm:$0xff]   ;;  %892 = vmatpush3.bf16.msra.mxu1 %v957_v3  ;;  %v962_v7 = vld [vmem:[%s1360_s1 + $0x20] ss:$12 sps:$4 sm:$0xff]   ;;  %v965_v9 = vld [vmem:[%s1360_s1 + $0xf8] ss:$12 sps:$4 sm:$0xff]  }
   0x4   :  { %536 = vmatprep.subr.bf16.mxu0 %v958_v4  ;;  %893 = vmatprep.subr.bf16.mxu1 %v960_v5  ;;  %v963_v8 = vld [vmem:[%s1360_s1 + $0x34] ss:$12 sps:$4 sm:$0xff]   ;;  %v966_v10 = vld [vmem:[%s1360_s1 + $0x30] ss:$12 sps:$4 sm:$0xff]   ;;  %v967_v11 = vld [vmem:[%s1360_s1 + $0x38] ss:$12 sps:$4 sm:$0xff]  }
   0x5   :  { %v968_v12 = vld [vmem:[%s1360_s1 + $0x4c] ss:$12 sps:$4 sm:$0xff]   ;;  %v970_v13 = vld [vmem:[%s1360_s1 + $0x110] ss:$12 sps:$4 sm:$0xff]   ;;  %v971_v14 = vld [vmem:[%s1360_s1 + $0x48] ss:$12 sps:$4 sm:$0xff]  }
   0x6   :  { %v972_v15 = vld [vmem:[%s1360_s1 + $0x50] ss:$12 sps:$4 sm:$0xff]   ;;  %v975_v17 = vld [vmem:[%s1360_s1 + $0x128] ss:$12 sps:$4 sm:$0xff]   ;;  %v976_v18 = vld [vmem:[%s1360_s1 + $0x60] ss:$12 sps:$4 sm:$0xff]  }
   0x7   :  { %537 = vmatpush1.bf16.msra.mxu0 %v961_v6  ;;  %894 = vmatpush3.bf16.msra.mxu1 %v962_v7  ;;  %v973_v16 = vld [vmem:[%s1360_s1 + $0x64] ss:$12 sps:$4 sm:$0xff]   ;;  %v977_v19 = vld [vmem:[%s1360_s1 + $0x68] ss:$12 sps:$4 sm:$0xff]   ;;  %v980_v21 = vld [vmem:[%s1360_s1 + $0x140] ss:$12 sps:$4 sm:$0xff]  }
   0x8   :  { %538 = vmatprep.subr.bf16.mxu0 %v963_v8  ;;  %895 = vmatprep.subr.bf16.mxu1 %v965_v9  ;;  %v978_v20 = vld [vmem:[%s1360_s1 + $0x7c] ss:$12 sps:$4 sm:$0xff]   ;;  %v981_v22 = vld [vmem:[%s1360_s1 + $0x78] ss:$12 sps:$4 sm:$0xff]   ;;  %v982_v23 = vld [vmem:[%s1360_s1 + $0x80] ss:$12 sps:$4 sm:$0xff]  }
   0x9   :  { %v983_v24 = vld [vmem:[%s1360_s1 + $0x94] ss:$12 sps:$4 sm:$0xff]   ;;  %v985_v25 = vld [vmem:[%s1360_s1 + $0x158] ss:$12 sps:$4 sm:$0xff]   ;;  %v986_v26 = vld [vmem:[%s1360_s1 + $0x90] ss:$12 sps:$4 sm:$0xff]  }
   0xa   :  { %v987_v27 = vld [vmem:[%s1360_s1 + $0x98] ss:$12 sps:$4 sm:$0xff]   ;;  %v990_v29 = vld [vmem:[%s1360_s1 + $0x170] ss:$12 sps:$4 sm:$0xff]   ;;  %v991_v30 = vld [vmem:[%s1360_s1 + $0xa8] ss:$12 sps:$4 sm:$0xff]  }
   0xb   :  { %539 = vmatpush1.bf16.msra.mxu0 %v966_v10  ;;  %896 = vmatpush3.bf16.msra.mxu1 %v967_v11  ;;  %v988_v28 = vld [vmem:[%s1360_s1 + $0xac] ss:$12 sps:$4 sm:$0xff]   ;;  %v992_v31 = vld [vmem:[%s1360_s1 + $0xb0] ss:$12 sps:$4 sm:$0xff]   ;;  %v999_v36 = vld [vmem:[%s1360_s1 + $0x188] ss:$12 sps:$4 sm:$0xff]  }
   0xc   :  { %540 = vmatprep.subr.bf16.mxu0 %v968_v12  ;;  %897 = vmatprep.subr.bf16.mxu1 %v970_v13  ;;  %v997_v32 = vld [vmem:[%s1361_s0 + $0x4] ss:$12 sps:$4 sm:$0xff]   ;;  %v1186_v34 = vld [vmem:[%s1361_s0] ss:$12 sps:$4 sm:$0xff]   ;;  %v1000_v37 = vld [vmem:[%s1360_s1 + $0xdc] ss:$12 sps:$4 sm:$0xff]  }
   0xd   :  { %v993_v33 = vld [vmem:[%s1360_s1 + $0xc4] ss:$12 sps:$4 sm:$0xff]   ;;  %652 = vmatprep.mubr.bf16.mxu1 %v997_v32  ;;  %566 = vmatprep.mubr.bf16.mxu0 %v997_v32  ;;  %v998_v35 = vld [vmem:[%s1360_s1 + $0xc0] ss:$12 sps:$4 sm:$0xff]   ;;  %v1010_v45 = vld [vmem:[%s1360_s1 + $0x108] ss:$12 sps:$4 sm:$0xff]  }
   0xe   :  { %v1002_v39 = vld [vmem:[%s1360_s1 + $0xd8] ss:$12 sps:$4 sm:$0xff]   ;;  %v1003_v40 = vld [vmem:[%s1360_s1 + $0x1a0] ss:$12 sps:$4 sm:$0xff]   ;;  %v1006_v42 = vld [vmem:[%s1360_s1 + $0xf0] ss:$12 sps:$4 sm:$0xff]  }
   0xf   :  { %541 = vmatpush1.bf16.msra.mxu0 %v971_v14  ;;  %898 = vmatpush3.bf16.msra.mxu1 %v972_v15  ;;  %v1004_v41 = vld [vmem:[%s1360_s1 + $0xf4] ss:$12 sps:$4 sm:$0xff]   ;;  %v1007_v43 = vld [vmem:[%s1360_s1 + $0x1b8] ss:$12 sps:$4 sm:$0xff]   ;;  %v1011_v46 = vld [vmem:[%s1360_s1 + $0x1d0] ss:$12 sps:$4 sm:$0xff]  }
  0x10   :  { %542 = vmatprep.subr.bf16.mxu0 %v973_v16  ;;  %899 = vmatprep.subr.bf16.mxu1 %v975_v17  ;;  %v1008_v44 = vld [vmem:[%s1360_s1 + $0x10c] ss:$12 sps:$4 sm:$0xff]   ;;  %v1012_v47 = vld [vmem:[%s1360_s1 + $0x124] ss:$12 sps:$4 sm:$0xff]   ;;  %v1015_v49 = vld [vmem:[%s1360_s1 + $0x1e8] ss:$12 sps:$4 sm:$0xff]  }
  0x11   :  { %v1014_v48 = vld [vmem:[%s1360_s1 + $0x120] ss:$12 sps:$4 sm:$0xff]   ;;  %v1016_v50 = vld [vmem:[%s1360_s1 + $0x13c] ss:$12 sps:$4 sm:$0xff]   ;;  %v1018_v51 = vld [vmem:[%s1360_s1 + $0x138] ss:$12 sps:$4 sm:$0xff]  }
  0x12   :  { %v1019_v52 = vld [vmem:[%s1360_s1 + $0x200] ss:$12 sps:$4 sm:$0xff]   ;;  %v1022_v54 = vld [vmem:[%s1360_s1 + $0x150] ss:$12 sps:$4 sm:$0xff]   ;;  %v1023_v55 = vld [vmem:[%s1360_s1 + $0x218] ss:$12 sps:$4 sm:$0xff]  }
  0x13   :  { %543 = vmatpush1.bf16.msra.mxu0 %v976_v18  ;;  %900 = vmatpush3.bf16.msra.mxu1 %v977_v19  ;;  %v1020_v53 = vld [vmem:[%s1360_s1 + $0x154] ss:$12 sps:$4 sm:$0xff]   ;;  %v1024_v56 = vld [vmem:[%s1360_s1 + $0x16c] ss:$12 sps:$4 sm:$0xff]   ;;  %v1027_v58 = vld [vmem:[%s1360_s1 + $0x230] ss:$12 sps:$4 sm:$0xff]   ;;  %v119_v19 = vlaneseq }
  0x14   :  { %544 = vmatprep.subr.bf16.mxu0 %v978_v20  ;;  %901 = vmatprep.subr.bf16.mxu1 %v980_v21  ;;  %v1026_v57 = vld [vmem:[%s1360_s1 + $0x168] ss:$12 sps:$4 sm:$0xff]   ;;  %v1030_v59 = vld [vmem:[%s1360_s1 + $0x184] ss:$12 sps:$4 sm:$0xff]   ;;  %v1028_v60 = vld [vmem:[%s1360_s1 + $0x180] ss:$12 sps:$4 sm:$0xff]  }
  0x15   :  { %v1031_v61 = vld [vmem:[%s1361_s0 + $0x8] ss:$12 sps:$4 sm:$0xff]   ;;  %v1032_v63 = vld [vmem:[%s1360_s1 + $0x198] ss:$12 sps:$4 sm:$0xff]   ;;  %v1055_v1 = vmov 0   ;;  %v1310_v20 = vshrl.u32 %v119_v19, 7 }
  0x16   :  { %v1034_v62 = vld [vmem:[%s1360_s1 + $0x19c] ss:$12 sps:$4 sm:$0xff]   ;;  %v1037_v0 = vld [vmem:[%s1360_s1 + $0x1b4] ss:$12 sps:$4 sm:$0xff]   ;;  %v1040_v3 = vld [vmem:[%s1360_s1 + $0x1cc] ss:$12 sps:$4 sm:$0xff]  }
  0x17   :  { %545 = vmatpush1.bf16.msra.mxu0 %v981_v22  ;;  %902 = vmatpush3.bf16.msra.mxu1 %v982_v23  ;;  %v1035_v2 = vld [vmem:[%s1360_s1 + $0x1b0] ss:$12 sps:$4 sm:$0xff]   ;;  %v1038_v4 = vld [vmem:[%s1360_s1 + $0x1c8] ss:$12 sps:$4 sm:$0xff]   ;;  %v1041_v6 = vld [vmem:[%s1360_s1 + $0x1e0] ss:$12 sps:$4 sm:$0xff]  }
  0x18   :  { %546 = vmatprep.subr.bf16.mxu0 %v983_v24  ;;  %903 = vmatprep.subr.bf16.mxu1 %v985_v25  ;;  %v1043_v5 = vld [vmem:[%s1360_s1 + $0x1e4] ss:$12 sps:$4 sm:$0xff]   ;;  %v1046_v7 = vld [vmem:[%s1360_s1 + $0x1fc] ss:$12 sps:$4 sm:$0xff]   ;;  %v1049_v9 = vld [vmem:[%s1360_s1 + $0x214] ss:$12 sps:$4 sm:$0xff]  }
  0x19   :  { %v1044_v8 = vld [vmem:[%s1360_s1 + $0x1f8] ss:$12 sps:$4 sm:$0xff]   ;;  %v1047_v10 = vld [vmem:[%s1360_s1 + $0x210] ss:$12 sps:$4 sm:$0xff]   ;;  %v1050_v12 = vld [vmem:[%s1360_s1 + $0x228] ss:$12 sps:$4 sm:$0xff]  }
  0x1a   :  { %v1052_v11 = vld [vmem:[%s1360_s1 + $0x22c] ss:$12 sps:$4 sm:$0xff]   ;;  %v129_v21 = vsub.s32 2, %v1310_v20  ;;  %v117_v22 = vld [vmem:[%s1362_s2] sm:$0x7]  ;;  %vm733_vm1 = vcmp.lt.s32.totalorder %v1310_v20, 2 }
  0x1b   :  { %547 = vmatpush1.bf16.msra.mxu0 %v986_v26  ;;  %904 = vmatpush3.bf16.msra.mxu1 %v987_v27  ;;  %vm790_vm2 = vcmp.eq.s32.totalorder %v1310_v20, 1  ;;  %vm789_vm3 = vcmp.eq.s32.totalorder %v1310_v20, 0 }
  0x1c   :  { %548 = vmatprep.subr.bf16.mxu0 %v988_v28  ;;  %905 = vmatprep.subr.bf16.mxu1 %v990_v29  ;;  %v130_v23 = vrot.slane %v117_v22, %v129_v21 }
  0x1f   :  { %549 = vmatpush1.bf16.msra.mxu0 %v991_v30  ;;  %906 = vmatpush3.bf16.msra.mxu1 %v992_v31 }
  0x20   :  { %550 = vmatprep.subr.bf16.mxu0 %v993_v33  ;;  %922 = vmatprep.subr.bf16.mxu1 %v1053_v38 }
  0x22   :  { %653 = vmatmul.mubr.bf16.vlgmr.msra.gmra.mrb[0].mxu1 %v1186_v34 }
  0x23   :  { %551 = vmatpush1.bf16.msra.mxu0 %v998_v35  ;;  %923 = vmatpush3.bf16.msra.mxu1 %v999_v36 }
  0x24   :  { %552 = vmatprep.subr.bf16.mxu0 %v1000_v37  ;;  %924 = vmatprep.subr.bf16.mxu1 %v1053_v38 }
  0x25   :  { %938 = vmatprep.mubr.msk.bf16.mxu1 %vm1054_vm0, %v1053_v38 }
  0x27   :  { %553 = vmatpush1.bf16.msra.mxu0 %v1002_v39  ;;  %925 = vmatpush3.bf16.msra.mxu1 %v1003_v40 }
  0x28   :  { %554 = vmatprep.subr.bf16.mxu0 %v1004_v41  ;;  %926 = vmatprep.subr.bf16.mxu1 %v1053_v38 }
  0x2b   :  { %555 = vmatpush1.bf16.msra.mxu0 %v1006_v42  ;;  %927 = vmatpush3.bf16.msra.mxu1 %v1007_v43 }
  0x2c   :  { %556 = vmatprep.subr.bf16.mxu0 %v1008_v44  ;;  %928 = vmatprep.subr.bf16.mxu1 %v1053_v38 }
  0x2f   :  { %557 = vmatpush1.bf16.msra.mxu0 %v1010_v45  ;;  %929 = vmatpush3.bf16.msra.mxu1 %v1011_v46 }
  0x30   :  { %558 = vmatprep.subr.bf16.mxu0 %v1012_v47  ;;  %930 = vmatprep.subr.bf16.mxu1 %v1053_v38 }
  0x33   :  { %559 = vmatpush1.bf16.msra.mxu0 %v1014_v48  ;;  %931 = vmatpush3.bf16.msra.mxu1 %v1015_v49 }
  0x34   :  { %560 = vmatprep.subr.bf16.mxu0 %v1016_v50  ;;  %932 = vmatprep.subr.bf16.mxu1 %v1053_v38  ;;  %v121_v50 = vsub.s32 0, %v1310_v20 }
  0x37   :  { %561 = vmatpush1.bf16.msra.mxu0 %v1018_v51  ;;  %933 = vmatpush3.bf16.msra.mxu1 %v1019_v52  ;;  %v125_v51 = vsub.s32 1, %v1310_v20  ;;  %v122_v52 = vrot.slane %v117_v22, %v121_v50 }
  0x38   :  { %562 = vmatprep.subr.bf16.mxu0 %v1020_v53  ;;  %934 = vmatprep.subr.bf16.mxu1 %v1053_v38 }
  0x39   :  { %v126_v53 = vrot.slane %v117_v22, %v125_v51 }
  0x3b   :  { %563 = vmatpush1.bf16.msra.mxu0 %v1022_v54  ;;  %935 = vmatpush3.bf16.msra.mxu1 %v1023_v55 }
  0x3c   :  { %564 = vmatprep.subr.bf16.mxu0 %v1024_v56  ;;  %936 = vmatprep.subr.bf16.mxu1 %v1053_v38 }
  0x3f   :  { %565 = vmatpush1.bf16.msra.mxu0 %v1026_v57  ;;  %937 = vmatpush3.bf16.msra.mxu1 %v1027_v58 }
  0x40   :  { %577 = vmatprep.subr.bf16.mxu0 %v1030_v59 }
  0x42   :  { %567 = vmatmul.mubr.bf16.vlgmr.msra.gmra.mrb[0].mxu0 %v1186_v34  ;;  %939 = vmatmul.mubr.bf16.vlgmr.msra.gmra.mrb[4].mxu1 %v1031_v61 }
  0x43   :  { %578 = vmatpush1.bf16.msra.mxu0 %v1028_v60  ;;  %609 = vmatprep.mubr.bf16.mxu0 %v1055_v1 }
  0x44   :  { %579 = vmatprep.subr.bf16.mxu0 %v1034_v62 }
  0x47   :  { %580 = vmatpush1.bf16.msra.mxu0 %v1032_v63 }
  0x48   :  { %581 = vmatprep.subr.bf16.mxu0 %v1037_v0 }
  0x4b   :  { %582 = vmatpush1.bf16.msra.mxu0 %v1035_v2 }
  0x4c   :  { %583 = vmatprep.subr.bf16.mxu0 %v1040_v3 }
  0x4f   :  { %584 = vmatpush1.bf16.msra.mxu0 %v1038_v4 }
  0x50   :  { %585 = vmatprep.subr.bf16.mxu0 %v1043_v5 }
  0x53   :  { %586 = vmatpush1.bf16.msra.mxu0 %v1041_v6 }
  0x54   :  { %587 = vmatprep.subr.bf16.mxu0 %v1046_v7 }
  0x57   :  { %588 = vmatpush1.bf16.msra.mxu0 %v1044_v8 }
  0x58   :  { %589 = vmatprep.subr.bf16.mxu0 %v1049_v9 }
  0x5b   :  { %590 = vmatpush1.bf16.msra.mxu0 %v1047_v10 }
  0x5c   :  { %591 = vmatprep.subr.bf16.mxu0 %v1052_v11 }
  0x5f   :  { %592 = vmatpush1.bf16.msra.mxu0 %v1050_v12 }
  0x62   :  { %610 = vmatmul.mubr.bf16.vlgmr.msra.gmra.mrb[0].mxu0 %v1031_v61 }
  0xf5   :  { %v907_v13 = vpop.f32.mrb[0].mxu1 }
  0xf6   :  { %v908_v14 = vpop.f32.mrb[1].mxu1 }
  0xf7   :  { %v909_v15 = vadd.f32 %v908_v14, %v907_v13  ;;  %v910_v16 = vpop.f32.mrb[2].mxu1 }
  0xf8   :  { %v911_v17 = vpop.f32.mrb[3].mxu1 }
  0xf9   :  { %v912_v18 = vadd.f32 %v911_v17, %v910_v16  ;;  %v655_v24 = vadd.f32 %v909_v15, %v130_v23 }
  0xfb   :  { %v658_v25 = vadd.f32 %v912_v18, %v130_v23 }
 0x115   :  { %v695_v26 = vpop.f32.mrb[4].mxu1 }
 0x116   :  { %v696_v27 = vadd.f32 %v695_v26, %v655_v24  ;;  %v940_v28 = vpop.f32.mrb[5].mxu1 }
 0x117   :  { %v698_v29 = vpop.f32.mrb[6].mxu1 }
 0x118   :  { %v888_v30 = vpack.c.bf16 %v696_v27, %v696_v27  ;;  %v737_v31 = vsel %vm733_vm1, %v696_v27, 0.0  ;;  %v699_v32 = vadd.f32 %v698_v29, %v658_v25  ;;  %v941_v33 = vpop.f32.mrb[7].mxu1 }
 0x119   :  { %v756_v34 = vrot.slane %v737_v31, 4  ;;  %v764_v35 = vmul.f32 %v737_v31, %v737_v31 }
 0x11a   :  { %723 = vst [vmem:[%s1363_s3 + $0x8] sm:$0xf] %v888_v30  ;;  %v890_v36 = vpack.c.bf16 %v699_v32, %v699_v32 }
 0x11b   :  { %v757_v37 = vadd.f32 %v756_v34, %v737_v31  ;;  %v783_v38 = vrot.slane %v764_v35, 4 }
 0x11c   :  { %725 = vst [vmem:[%s1363_s3 + $0x14] sm:$0xf] %v890_v36 }
 0x11d   :  { %v758_v39 = vrot.slane %v757_v37, 2  ;;  %v784_v40 = vadd.f32 %v783_v38, %v764_v35 }
 0x11f   :  { %v759_v41 = vadd.f32 %v758_v39, %v757_v37  ;;  %v785_v42 = vrot.slane %v784_v40, 2 }
 0x121   :  { %v786_v43 = vadd.f32 %v785_v42, %v784_v40  ;;  %v760_v44 = vrot.slane %v759_v41, 1 }
 0x123   :  { %v787_v45 = vrot.slane %v786_v43, 1  ;;  %v761_v47 = vadd.f32 %v760_v44, %v759_v41 }
 0x125   :  { %v788_v46 = vadd.f32 %v787_v45, %v786_v43 }
 0x127   :  { %v793_v48 = vsel %vm790_vm2, %v788_v46, 0.0 }
 0x128   :  { %v796_v49 = vsel %vm789_vm3, %v761_v47, %v793_v48 }
 0x129   :  { %799 = vst [vmem:[%s1364_s4 + $0x10] sm:$0xff] %v796_v49 }
 0x135   :  { %v611_v54 = vpop.f32.mrb[0].mxu0 }
 0x136   :  { %v942_v55 = vadd.f32 %v611_v54, %v122_v52  ;;  %v613_v56 = vpop.f32.mrb[1].mxu0 }
 0x137   :  { %v943_v57 = vadd.f32 %v613_v56, %v126_v53  ;;  %v615_v58 = vpop.f32.mrb[2].mxu0 }
 0x138   :  { %v735_v59 = vsel %vm733_vm1, %v942_v55, 0.0  ;;  %v944_v60 = vadd.f32 %v615_v58, %v122_v52  ;;  %v617_v61 = vpop.f32.mrb[3].mxu0 }
 0x139   :  { %v742_v62 = vrot.slane %v735_v59, 4  ;;  %v762_v63 = vmul.f32 %v735_v59, %v735_v59  ;;  %v887_v0 = vpack.c.bf16 %v943_v57, %v942_v55  ;;  %v736_v1 = vsel %vm733_vm1, %v943_v57, 0.0 }
 0x13a   :  { %v749_v2 = vrot.slane %v736_v1, 4  ;;  %v763_v3 = vmul.f32 %v736_v1, %v736_v1  ;;  %v945_v4 = vadd.f32 %v617_v61, %v126_v53 }
 0x13b   :  { %v743_v5 = vadd.f32 %v742_v62, %v735_v59  ;;  %v769_v6 = vrot.slane %v762_v63, 4  ;;  %722 = vst [vmem:[%s1363_s3] sm:$0xff] %v887_v0 }
 0x13c   :  { %v750_v7 = vadd.f32 %v749_v2, %v736_v1  ;;  %v776_v8 = vrot.slane %v763_v3, 4  ;;  %v889_v9 = vpack.c.bf16 %v945_v4, %v944_v60 }
 0x13d   :  { %v744_v10 = vrot.slane %v743_v5, 2  ;;  %v770_v11 = vadd.f32 %v769_v6, %v762_v63 }
 0x13e   :  { %v751_v12 = vrot.slane %v750_v7, 2  ;;  %v777_v13 = vadd.f32 %v776_v8, %v763_v3  ;;  %724 = vst [vmem:[%s1363_s3 + $0xc] sm:$0xff] %v889_v9 }
 0x13f   :  { %v745_v14 = vadd.f32 %v744_v10, %v743_v5  ;;  %v771_v15 = vrot.slane %v770_v11, 2 }
 0x140   :  { %v752_v16 = vadd.f32 %v751_v12, %v750_v7  ;;  %v778_v17 = vrot.slane %v777_v13, 2 }
 0x141   :  { %v772_v18 = vadd.f32 %v771_v15, %v770_v11  ;;  %v746_v19 = vrot.slane %v745_v14, 1 }
 0x142   :  { %v779_v21 = vadd.f32 %v778_v17, %v777_v13  ;;  %v753_v23 = vrot.slane %v752_v16, 1 }
 0x143   :  { %v773_v22 = vrot.slane %v772_v18, 1  ;;  %v747_v26 = vadd.f32 %v746_v19, %v745_v14 }
 0x144   :  { %v780_v24 = vrot.slane %v779_v21, 1  ;;  %v754_v29 = vadd.f32 %v753_v23, %v752_v16 }
 0x145   :  { %v774_v25 = vadd.f32 %v773_v22, %v772_v18 }
 0x146   :  { %v781_v27 = vadd.f32 %v780_v24, %v779_v21 }
 0x147   :  { %v791_v28 = vsel %vm790_vm2, %v774_v25, 0.0 }
 0x148   :  { %v794_v30 = vsel %vm789_vm3, %v747_v26, %v791_v28  ;;  %v792_v31 = vsel %vm790_vm2, %v781_v27, 0.0 }
 0x149   :  { %797 = vst [vmem:[%s1364_s4] sm:$0xff] %v794_v30  ;;  %v795_v32 = vsel %vm789_vm3, %v754_v29, %v792_v31 }
 0x14a   :  { %798 = vst [vmem:[%s1364_s4 + $0x8] sm:$0xff] %v795_v32 }

// kernel: ut3nnet_forward.3
= control target key start
LH: loop header
LB: loop body
LE: loop exit
PB: predicated region body
PF: predicated region fallthrough
CT: control target
= control target key end

     0   :  { %v527_v1 = vmov 0.0   ;;  %vm528_vm0 = vmmov 0   ;;  %v36_v14 = vlaneseq  ;;  %s674_s3 = inlined_call_operand.vmem [shape: bf16[384,128], index: 3, kind: input, shape index: {}]   ;;  %s675_s0 = inlined_call_operand.vmem [shape: bf16[16,384], index: 0, kind: input, shape index: {}]   ;;  %s676_s1 = inlined_call_operand.vmem [shape: f32[1,384], index: 1, kind: input, shape index: {}]   ;;  %s677_s2 = inlined_call_operand.vmem [shape: f32[1,384], index: 2, kind: input, shape index: {}]   ;;  %s678_s4 = inlined_call_operand.vmem [shape: f32[1,128], index: 4, kind: input, shape index: {}]   ;;  %s679_s5 = inlined_call_operand.vmem [shape: f32[1,128], index: 5, kind: input, shape index: {}]   ;;  %s680_s6 = inlined_call_operand.vmem [shape: f32[16,128], index: 6, kind: output, shape index: {}]  }
   0x1   :  { %v491_v0 = vld [vmem:[%s674_s3 + $0x40] sm:$0xff]   ;;  %469 = vmatprep.subr.bf16.mxu1 %v527_v1  ;;  %485 = vmatprep.mubr.msk.bf16.mxu1 %vm528_vm0, %v527_v1  ;;  %v494_v4 = vld [vmem:[%s674_s3 + $0x48] sm:$0xff]   ;;  %v497_v7 = vld [vmem:[%s674_s3 + $0x50] sm:$0xff]  }
   0x2   :  { %v492_v2 = vld [vmem:[%s674_s3] sm:$0xff]   ;;  %438 = vmatprep.subr.bf16.mxu0 %v491_v0  ;;  %v495_v5 = vld [vmem:[%s674_s3 + $0x8] sm:$0xff]   ;;  %v498_v8 = vld [vmem:[%s674_s3 + $0x10] sm:$0xff]   ;;  %v37_v18 = vshrl.u32 %v36_v14, 7 }
   0x3   :  { %v493_v3 = vld [vmem:[%s674_s3 + $0x80] sm:$0xff]   ;;  %439 = vmatpush3.bf16.msra.mxu0 %v492_v2  ;;  %v496_v6 = vld [vmem:[%s674_s3 + $0x88] sm:$0xff]   ;;  %v499_v9 = vld [vmem:[%s674_s3 + $0x90] sm:$0xff]  }
   0x4   :  { %470 = vmatpush3.bf16.msra.mxu1 %v493_v3  ;;  %440 = vmatprep.subr.bf16.mxu0 %v494_v4  ;;  %v500_v10 = vld [vmem:[%s674_s3 + $0x58] sm:$0xff]   ;;  %v503_v13 = vld [vmem:[%s674_s3 + $0x60] sm:$0xff]   ;;  %v506_v17 = vld [vmem:[%s674_s3 + $0x68] sm:$0xff]   ;;  %v42_v22 = vsub.s32 1, %v37_v18  ;;  %v38_v24 = vsub.s32 0, %v37_v18  ;;  %v46_v27 = vsub.s32 2, %v37_v18 }
   0x5   :  { %471 = vmatprep.subr.bf16.mxu1 %v527_v1  ;;  %v501_v11 = vld [vmem:[%s674_s3 + $0x18] sm:$0xff]   ;;  %v504_v15 = vld [vmem:[%s674_s3 + $0x20] sm:$0xff]   ;;  %v507_v19 = vld [vmem:[%s674_s3 + $0x28] sm:$0xff]  }
   0x6   :  { %v502_v12 = vld [vmem:[%s674_s3 + $0x98] sm:$0xff]   ;;  %v505_v16 = vld [vmem:[%s674_s3 + $0xa0] sm:$0xff]   ;;  %v508_v20 = vld [vmem:[%s674_s3 + $0xa8] sm:$0xff]  }
   0x7   :  { %441 = vmatpush3.bf16.msra.mxu0 %v495_v5  ;;  %v509_v21 = vld [vmem:[%s674_s3 + $0x70] sm:$0xff]   ;;  %v512_v26 = vld [vmem:[%s674_s3 + $0x78] sm:$0xff]   ;;  %v24_v28 = vld [vmem:[%s675_s0] sm:$0xff] }
   0x8   :  { %472 = vmatpush3.bf16.msra.mxu1 %v496_v6  ;;  %442 = vmatprep.subr.bf16.mxu0 %v497_v7  ;;  %v510_v23 = vld [vmem:[%s674_s3 + $0x30] sm:$0xff]   ;;  %v34_v30 = vld [vmem:[%s676_s1] sm:$0x7]  ;;  %v28_v31 = vunpack.c.l.bf16 %v24_v28  ;;  %v29_v32 = vunpack.c.h.bf16 %v24_v28  ;;  %v513_v45 = vld [vmem:[%s674_s3 + $0x38] sm:$0xff]  }
   0x9   :  { %473 = vmatprep.subr.bf16.mxu1 %v527_v1  ;;  %v511_v25 = vld [vmem:[%s674_s3 + $0xb0] sm:$0xff]   ;;  %v57_v35 = vld [vmem:[%s677_s2] sm:$0x7]  ;;  %v43_v36 = vrot.slane %v34_v30, %v42_v22  ;;  %v39_v38 = vrot.slane %v34_v30, %v38_v24  ;;  %v47_v43 = vrot.slane %v34_v30, %v46_v27  ;;  %v514_v50 = vld [vmem:[%s674_s3 + $0xb8] sm:$0xff]  }
   0xa   :  { %v26_v29 = vld [vmem:[%s675_s0 + $0xc] sm:$0xff]  ;;  %v66_v37 = vrot.slane %v57_v35, %v42_v22  ;;  %v62_v39 = vrot.slane %v57_v35, %v38_v24  ;;  %v25_v40 = vld [vmem:[%s675_s0 + $0x8] ss:$12 sps:$4 sm:$0xff]   ;;  %v70_v44 = vrot.slane %v57_v35, %v46_v27  ;;  %v412_v7 = vld [vmem:[%s678_s4] ss:$0 sm:$0xff] }
   0xb   :  { %443 = vmatpush3.bf16.msra.mxu0 %v498_v8  ;;  %v31_v33 = vunpack.c.l.bf16 %v26_v29  ;;  %v32_v34 = vunpack.c.h.bf16 %v26_v29  ;;  %v30_v41 = vunpack.c.l.bf16 %v25_v40  ;;  %v33_v42 = vunpack.c.h.bf16 %v25_v40 }
   0xc   :  { %474 = vmatpush3.bf16.msra.mxu1 %v499_v9  ;;  %444 = vmatprep.subr.bf16.mxu0 %v500_v10  ;;  %v52_v46 = vmul.f32 %v43_v36, %v29_v32  ;;  %v51_v48 = vmul.f32 %v39_v38, %v28_v31 }
   0xd   :  { %475 = vmatprep.subr.bf16.mxu1 %v527_v1  ;;  %v55_v47 = vmul.f32 %v43_v36, %v32_v34  ;;  %v54_v49 = vmul.f32 %v39_v38, %v31_v33  ;;  %v53_v51 = vmul.f32 %v47_v43, %v30_v41  ;;  %v56_v52 = vmul.f32 %v47_v43, %v33_v42 }
   0xe   :  { %v75_v53 = vadd.f32 %v66_v37, %v52_v46  ;;  %v74_v55 = vadd.f32 %v62_v39, %v51_v48  ;;  %v400_v33 = vand.u32 127, %v36_v14 }
   0xf   :  { %445 = vmatpush3.bf16.msra.mxu0 %v501_v11  ;;  %v78_v54 = vadd.f32 %v66_v37, %v55_v47  ;;  %v77_v56 = vadd.f32 %v62_v39, %v54_v49  ;;  %v76_v57 = vadd.f32 %v70_v44, %v53_v51  ;;  %v79_v58 = vadd.f32 %v70_v44, %v56_v52 }
  0x10   :  { %476 = vmatpush3.bf16.msra.mxu1 %v502_v12  ;;  %446 = vmatprep.subr.bf16.mxu0 %v503_v13  ;;  %v81_v59 = vmax.f32 %v75_v53, 0.0  ;;  %v80_v61 = vmax.f32 %v74_v55, 0.0  ;;  %vm401_vm1 = vcmp.eq.s32.totalorder %v400_v33, 82 }
  0x11   :  { %477 = vmatprep.subr.bf16.mxu1 %v527_v1  ;;  %v84_v60 = vmax.f32 %v78_v54, 0.0  ;;  %v83_v62 = vmax.f32 %v77_v56, 0.0  ;;  %v82_v63 = vmax.f32 %v76_v57, 0.0  ;;  %v85_v0 = vmax.f32 %v79_v58, 0.0 }
  0x13   :  { %447 = vmatpush3.bf16.msra.mxu0 %v504_v15  ;;  %v87_v2 = vpack.c.bf16 %v84_v60, %v81_v59  ;;  %v86_v3 = vpack.c.bf16 %v83_v62, %v80_v61  ;;  %v88_v4 = vpack.c.bf16 %v85_v0, %v82_v63 }
  0x14   :  { %478 = vmatpush3.bf16.msra.mxu1 %v505_v16  ;;  %448 = vmatprep.subr.bf16.mxu0 %v506_v17  ;;  %v437_v17 = vld [vmem:[%s679_s5] ss:$0 sm:$0xff] }
  0x15   :  { %479 = vmatprep.subr.bf16.mxu1 %v527_v1  ;;  %320 = vmatprep.mubr.bf16.mxu0 %v87_v2 }
  0x17   :  { %449 = vmatpush3.bf16.msra.mxu0 %v507_v19 }
  0x18   :  { %480 = vmatpush3.bf16.msra.mxu1 %v508_v20  ;;  %450 = vmatprep.subr.bf16.mxu0 %v509_v21 }
  0x19   :  { %481 = vmatprep.subr.bf16.mxu1 %v527_v1 }
  0x1b   :  { %451 = vmatpush3.bf16.msra.mxu0 %v510_v23 }
  0x1c   :  { %482 = vmatpush3.bf16.msra.mxu1 %v511_v25  ;;  %452 = vmatprep.subr.bf16.mxu0 %v512_v26 }
  0x1d   :  { %483 = vmatprep.subr.bf16.mxu1 %v527_v1 }
  0x1f   :  { %453 = vmatpush3.bf16.msra.mxu0 %v513_v45 }
  0x20   :  { %484 = vmatpush3.bf16.msra.mxu1 %v514_v50 }
  0x22   :  { %321 = vmatmul.mubr.bf16.vlgmr.msra.gmra.mrb[0].mxu0 %v86_v3 }
  0x23   :  { %486 = vmatmul.mubr.bf16.vlgmr.msra.gmra.mrb[0].mxu1 %v88_v4 }
  0xf5   :  { %v454_v1 = vpop.f32.mrb[0].mxu0 }
  0xf6   :  { %v363_v5 = vpop.f32.mrb[0].mxu1  ;;  %v455_v6 = vpop.f32.mrb[1].mxu0 }
  0xf7   :  { %v487_v8 = vpop.f32.mrb[1].mxu1  ;;  %v456_v9 = vadd.f32 %v455_v6, %v454_v1  ;;  %v457_v10 = vpop.f32.mrb[2].mxu0 }
  0xf8   :  { %v366_v11 = vpop.f32.mrb[2].mxu1  ;;  %v458_v12 = vpop.f32.mrb[3].mxu0 }
  0xf9   :  { %v488_v13 = vpop.f32.mrb[3].mxu1  ;;  %v323_v15 = vadd.f32 %v456_v9, %v412_v7  ;;  %v459_v16 = vadd.f32 %v458_v12, %v457_v10 }
  0xfb   :  { %v364_v18 = vadd.f32 %v363_v5, %v323_v15  ;;  %v326_v19 = vadd.f32 %v459_v16, %v412_v7 }
  0xfd   :  { %v367_v20 = vadd.f32 %v366_v11, %v326_v19  ;;  %v377_v21 = vadd.f32 %v437_v17, %v364_v18 }
  0xff   :  { %379 = vmax.xlane.f32.xlu0 %v377_v21  ;;  %v378_v22 = vadd.f32 %v437_v17, %v367_v20 }
 0x103   :  { %381 = vmax.xlane.f32.xlu0 %v378_v22 }
 0x18c   :  { %v380_v23 = vpop.xlane.xlu0 %379 }
 0x18d   :  { %v383_v24 = vsub.f32 %v377_v21, %v380_v23 }
 0x18f   :  { %v385_v25 = vmul.f32 1.442695, %v383_v24 }
 0x190   :  { %v382_v26 = vpop.xlane.xlu0 %381 }
 0x191   :  { %v384_v27 = vsub.f32 %v378_v22, %v382_v26  ;;  %515 = vpow2.f32 %v385_v25 }
 0x193   :  { %v387_v28 = vmul.f32 1.442695, %v384_v27 }
 0x195   :  { %517 = vpow2.f32 %v387_v28 }
 0x19b   :  { %v516_v29 = vpop.eup %515 }
 0x19c   :  { %389 = vadd.xlane.f32.xlu1 %v516_v29 }
 0x19f   :  { %v518_v30 = vpop.eup %517 }
 0x1a0   :  { %391 = vadd.xlane.f32.xlu1 %v518_v30 }
 0x229   :  { %v390_v31 = vpop.xlane.xlu1 %389 }
 0x22a   :  { %519 = vlog2.f32 %v390_v31 }
 0x22b   :  { %521 = vtanh.f32 %v364_v18 }
 0x22d   :  { %v392_v32 = vpop.xlane.xlu1 %391 }
 0x22e   :  { %523 = vlog2.f32 %v392_v32 }
 0x22f   :  { %525 = vtanh.f32 %v367_v20 }
 0x234   :  { %v520_v34 = vpop.eup %519 }
 0x235   :  { %v394_v35 = vmul.f32 0.6931472, %v520_v34  ;;  %v522_v36 = vpop.eup %521 }
 0x237   :  { %v397_v37 = vsub.f32 %v383_v24, %v394_v35 }
 0x238   :  { %v524_v38 = vpop.eup %523 }
 0x239   :  { %v404_v39 = vsel %vm401_vm1, %v522_v36, %v397_v37  ;;  %v396_v40 = vmul.f32 0.6931472, %v524_v38  ;;  %v526_v42 = vpop.eup %525 }
 0x23a   :  { %406 = vst [vmem:[%s680_s6] sm:$0xff] %v404_v39 }
 0x23b   :  { %v398_v41 = vsub.f32 %v384_v27, %v396_v40 }
 0x23d   :  { %v405_v43 = vsel %vm401_vm1, %v526_v42, %v398_v41 }
 0x23e   :  { %407 = vst [vmem:[%s680_s6 + $0x8] sm:$0xff] %v405_v43 }

</bundles_post_ra>
